<compile_context>
chip_gen: v7x
topology: tpu7x:2x2x1
jax: 0.10.0
libtpu: 0.0.40
codegen_flags: <defaults>
</compile_context>

<pallas_src>
import jax
import jax.numpy as jnp
from jax import lax
from jax.experimental import pallas as pl
from jax.experimental.pallas import tpu as pltpu


def _fused_bayesian_nn_kernel(*refs):
    """Fused forward over all Bayesian linear layers.

    refs = (x_ref, w0_ref, b0_ref, ..., wN_ref, bN_ref, o_ref)
      x_ref  : [B, D_in0]
      wi_ref : [3, D_out_i, D_in_i]   stacked (mu, log_sigma, eps)
      bi_ref : [3, 1, D_out_i]        stacked (mu, log_sigma, eps)
      o_ref  : [B, D_out_last]
    """
    x_ref = refs[0]
    o_ref = refs[-1]
    param_refs = refs[1:-1]
    n_layers = len(param_refs) // 2

    x = x_ref[...]                                          # [B, D_in0]
    for i in range(n_layers):
        w_ref = param_refs[2 * i]
        b_ref = param_refs[2 * i + 1]

        # Reparameterized weight / bias (VPU elementwise + EUP exp).
        w = w_ref[0] + jnp.exp(w_ref[1]) * w_ref[2]         # [D_out, D_in]
        b = b_ref[0] + jnp.exp(b_ref[1]) * b_ref[2]         # [1, D_out]

        # F.linear: x @ W.T + b, expressed as a contraction over the last
        # dims of both operands -> MXU matmul, no materialized transpose.
        y = lax.dot_general(
            x, w,
            dimension_numbers=(((1,), (1,)), ((), ())),
            preferred_element_type=jnp.float32,
        )
        y = y + b                                           # broadcast over batch

        is_last = (i == n_layers - 1)
        x = y if is_last else jnp.maximum(y, 0.0)

    o_ref[...] = x.astype(o_ref.dtype)


def bayesian_nn_forward(x_nchw, layers, task_idxs=None):
    """Full BayesianNN forward. x_nchw: [B, C, H, W] float32."""
    B = x_nchw.shape[0]
    x = x_nchw.reshape(B, -1).astype(jnp.float32)  # torch.flatten(x, start_dim=1)

    # Stack (mu, log_sigma, eps) per layer -> 2 DMAs per layer instead of 6.
    packed = []
    for p in layers:
        d_out = p["weight_mu"].shape[0]
        w_stack = jnp.stack(
            [p["weight_mu"], p["weight_log_sigma"], p["weight_eps"]], axis=0
        )                                                   # [3, D_out, D_in]
        b_stack = jnp.stack(
            [p["bias_mu"], p["bias_log_sigma"], p["bias_eps"]], axis=0
        ).reshape(3, 1, d_out)                              # [3, 1, D_out]
        packed += [w_stack, b_stack]

    out_dim = layers[-1]["weight_mu"].shape[0]

    # Single fused kernel; all params (~400 KiB) live in VMEM, no grid needed.
    y = pl.pallas_call(
        _fused_bayesian_nn_kernel,
        out_shape=jax.ShapeDtypeStruct((B, out_dim), jnp.float32),
        in_specs=[pl.BlockSpec(memory_space=pltpu.VMEM)] * (1 + len(packed)),
        out_specs=pl.BlockSpec(memory_space=pltpu.VMEM),
    )(x, *packed)

    if task_idxs is None:
        task_idxs = jnp.arange(out_dim)
    return y[:, task_idxs]


def init_bayesian_layer(key, in_dim, out_dim):
    """Deterministic synthetic parameters + resampled eps for one layer."""
    k_wmu, k_bmu, k_weps, k_beps = jax.random.split(key, 4)
    scale = 1.0 / jnp.sqrt(jnp.float32(in_dim))
    return {
        "weight_mu": jax.random.normal(k_wmu, (out_dim, in_dim), jnp.float32) * scale,
        "weight_log_sigma": jnp.full((out_dim, in_dim), -3.0, jnp.float32),
        "bias_mu": jax.random.normal(k_bmu, (out_dim,), jnp.float32) * scale,
        "bias_log_sigma": jnp.full((out_dim,), -3.0, jnp.float32),
        # resample_eps(): eps ~ N(0, 1)
        "weight_eps": jax.random.normal(k_weps, (out_dim, in_dim), jnp.float32),
        "bias_eps": jax.random.normal(k_beps, (out_dim,), jnp.float32),
    }


def reference_forward(x_nchw, layers, task_idxs=None):
    """Plain-JAX reference of the same forward pass (for sanity check)."""
    B = x_nchw.shape[0]
    x = x_nchw.reshape(B, -1)
    n = len(layers)
    for i, p in enumerate(layers):
        w = p["weight_mu"] + jnp.exp(p["weight_log_sigma"]) * p["weight_eps"]
        b = p["bias_mu"] + jnp.exp(p["bias_log_sigma"]) * p["bias_eps"]
        x = x @ w.T + b
        if i != n - 1:
            x = jnp.maximum(x, 0.0)
    if task_idxs is None:
        task_idxs = jnp.arange(x.shape[-1])
    return x[:, task_idxs]


if __name__ == "__main__":
    # Module config: num_hidden_layers=2 -> first_layer, 1 intermediate, last.
    num_hidden_layers = 2
    B, C, H, W = 2, 4, 16, 16
    input_dim = C * H * W          # 1024 after flatten
    hidden_dim = 32
    output_dim = 8

    key = jax.random.PRNGKey(0)
    k_x, k_l0, k_l1, k_l2 = jax.random.split(key, 4)

    x = jax.random.normal(k_x, (B, C, H, W), jnp.float32)

    layers = [
        init_bayesian_layer(k_l0, input_dim, hidden_dim),   # first_layer
        init_bayesian_layer(k_l1, hidden_dim, hidden_dim),  # intermediate (x1)
        init_bayesian_layer(k_l2, hidden_dim, output_dim),  # last_layer
    ]

    out = bayesian_nn_forward(x, layers)
    out = jax.block_until_ready(out)

    ref = reference_forward(x, layers)
    assert out.shape == (B, output_dim), out.shape
    assert jnp.allclose(out, ref, atol=1e-4, rtol=1e-4), "mismatch vs reference"

    print("KERNEL_OK")
</pallas_src>

<mosaic_0001>
module attributes {stable_mosaic.version = 11 : i64} {
  func.func @_fused_bayesian_nn_kernel(%arg0: memref<2x1024xf32, #tpu.memory_space<vmem>>, %arg1: memref<3x32x1024xf32, #tpu.memory_space<vmem>>, %arg2: memref<3x1x32xf32, #tpu.memory_space<vmem>>, %arg3: memref<3x32x32xf32, #tpu.memory_space<vmem>>, %arg4: memref<3x1x32xf32, #tpu.memory_space<vmem>>, %arg5: memref<3x8x32xf32, #tpu.memory_space<vmem>>, %arg6: memref<3x1x8xf32, #tpu.memory_space<vmem>>, %arg7: memref<2x8xf32, #tpu.memory_space<vmem>>) attributes {dimension_semantics = [], scalar_prefetch = 0 : i64, scratch_operands = 0 : i64, tpu.core_type = #tpu.core_type<tc>} {
    %c0 = arith.constant 0 : index
    %c0_0 = arith.constant 0 : index
    %0 = vector.load %arg0[%c0, %c0_0] : memref<2x1024xf32, #tpu.memory_space<vmem>>, vector<2x1024xf32>
    %c0_1 = arith.constant 0 : index
    %c0_2 = arith.constant 0 : index
    %c0_3 = arith.constant 0 : index
    %1 = vector.load %arg1[%c0_1, %c0_2, %c0_3] : memref<3x32x1024xf32, #tpu.memory_space<vmem>>, vector<1x32x1024xf32>
    %2 = vector.shape_cast %1 : vector<1x32x1024xf32> to vector<32x1024xf32>
    %c1 = arith.constant 1 : index
    %c0_4 = arith.constant 0 : index
    %c0_5 = arith.constant 0 : index
    %3 = vector.load %arg1[%c1, %c0_4, %c0_5] : memref<3x32x1024xf32, #tpu.memory_space<vmem>>, vector<1x32x1024xf32>
    %4 = vector.shape_cast %3 : vector<1x32x1024xf32> to vector<32x1024xf32>
    %5 = math.exp %4 : vector<32x1024xf32>
    %c2 = arith.constant 2 : index
    %c0_6 = arith.constant 0 : index
    %c0_7 = arith.constant 0 : index
    %6 = vector.load %arg1[%c2, %c0_6, %c0_7] : memref<3x32x1024xf32, #tpu.memory_space<vmem>>, vector<1x32x1024xf32>
    %7 = vector.shape_cast %6 : vector<1x32x1024xf32> to vector<32x1024xf32>
    %8 = arith.mulf %5, %7 : vector<32x1024xf32>
    %9 = arith.addf %2, %8 : vector<32x1024xf32>
    %c0_8 = arith.constant 0 : index
    %c0_9 = arith.constant 0 : index
    %c0_10 = arith.constant 0 : index
    %10 = vector.load %arg2[%c0_8, %c0_9, %c0_10] : memref<3x1x32xf32, #tpu.memory_space<vmem>>, vector<1x1x32xf32>
    %11 = vector.shape_cast %10 : vector<1x1x32xf32> to vector<1x32xf32>
    %c1_11 = arith.constant 1 : index
    %c0_12 = arith.constant 0 : index
    %c0_13 = arith.constant 0 : index
    %12 = vector.load %arg2[%c1_11, %c0_12, %c0_13] : memref<3x1x32xf32, #tpu.memory_space<vmem>>, vector<1x1x32xf32>
    %13 = vector.shape_cast %12 : vector<1x1x32xf32> to vector<1x32xf32>
    %14 = math.exp %13 : vector<1x32xf32>
    %c2_14 = arith.constant 2 : index
    %c0_15 = arith.constant 0 : index
    %c0_16 = arith.constant 0 : index
    %15 = vector.load %arg2[%c2_14, %c0_15, %c0_16] : memref<3x1x32xf32, #tpu.memory_space<vmem>>, vector<1x1x32xf32>
    %16 = vector.shape_cast %15 : vector<1x1x32xf32> to vector<1x32xf32>
    %17 = arith.mulf %14, %16 : vector<1x32xf32>
    %18 = arith.addf %11, %17 : vector<1x32xf32>
    %cst = arith.constant dense<0.000000e+00> : vector<2x32xf32>
    %19 = tpu.matmul %0, %9, %cst {dimension_numbers = #tpu.dot_dimension_numbers<[1], [1], [0], [0], [0, 0, 1, 0], [], []>} : vector<2x1024xf32>, vector<32x1024xf32>, vector<2x32xf32> -> vector<2x32xf32>
    %20 = vector.broadcast %18 : vector<1x32xf32> to vector<2x32xf32>
    %21 = arith.addf %19, %20 : vector<2x32xf32>
    %cst_17 = arith.constant 0.000000e+00 : f32
    %22 = vector.broadcast %cst_17 : f32 to vector<2x32xf32>
    %23 = arith.maximumf %21, %22 : vector<2x32xf32>
    %c0_18 = arith.constant 0 : index
    %c0_19 = arith.constant 0 : index
    %c0_20 = arith.constant 0 : index
    %24 = vector.load %arg3[%c0_18, %c0_19, %c0_20] : memref<3x32x32xf32, #tpu.memory_space<vmem>>, vector<1x32x32xf32>
    %25 = vector.shape_cast %24 : vector<1x32x32xf32> to vector<32x32xf32>
    %c1_21 = arith.constant 1 : index
    %c0_22 = arith.constant 0 : index
    %c0_23 = arith.constant 0 : index
    %26 = vector.load %arg3[%c1_21, %c0_22, %c0_23] : memref<3x32x32xf32, #tpu.memory_space<vmem>>, vector<1x32x32xf32>
    %27 = vector.shape_cast %26 : vector<1x32x32xf32> to vector<32x32xf32>
    %28 = math.exp %27 : vector<32x32xf32>
    %c2_24 = arith.constant 2 : index
    %c0_25 = arith.constant 0 : index
    %c0_26 = arith.constant 0 : index
    %29 = vector.load %arg3[%c2_24, %c0_25, %c0_26] : memref<3x32x32xf32, #tpu.memory_space<vmem>>, vector<1x32x32xf32>
    %30 = vector.shape_cast %29 : vector<1x32x32xf32> to vector<32x32xf32>
    %31 = arith.mulf %28, %30 : vector<32x32xf32>
    %32 = arith.addf %25, %31 : vector<32x32xf32>
    %c0_27 = arith.constant 0 : index
    %c0_28 = arith.constant 0 : index
    %c0_29 = arith.constant 0 : index
    %33 = vector.load %arg4[%c0_27, %c0_28, %c0_29] : memref<3x1x32xf32, #tpu.memory_space<vmem>>, vector<1x1x32xf32>
    %34 = vector.shape_cast %33 : vector<1x1x32xf32> to vector<1x32xf32>
    %c1_30 = arith.constant 1 : index
    %c0_31 = arith.constant 0 : index
    %c0_32 = arith.constant 0 : index
    %35 = vector.load %arg4[%c1_30, %c0_31, %c0_32] : memref<3x1x32xf32, #tpu.memory_space<vmem>>, vector<1x1x32xf32>
    %36 = vector.shape_cast %35 : vector<1x1x32xf32> to vector<1x32xf32>
    %37 = math.exp %36 : vector<1x32xf32>
    %c2_33 = arith.constant 2 : index
    %c0_34 = arith.constant 0 : index
    %c0_35 = arith.constant 0 : index
    %38 = vector.load %arg4[%c2_33, %c0_34, %c0_35] : memref<3x1x32xf32, #tpu.memory_space<vmem>>, vector<1x1x32xf32>
    %39 = vector.shape_cast %38 : vector<1x1x32xf32> to vector<1x32xf32>
    %40 = arith.mulf %37, %39 : vector<1x32xf32>
    %41 = arith.addf %34, %40 : vector<1x32xf32>
    %cst_36 = arith.constant dense<0.000000e+00> : vector<2x32xf32>
    %42 = tpu.matmul %23, %32, %cst_36 {dimension_numbers = #tpu.dot_dimension_numbers<[1], [1], [0], [0], [0, 0, 1, 0], [], []>} : vector<2x32xf32>, vector<32x32xf32>, vector<2x32xf32> -> vector<2x32xf32>
    %43 = vector.broadcast %41 : vector<1x32xf32> to vector<2x32xf32>
    %44 = arith.addf %42, %43 : vector<2x32xf32>
    %cst_37 = arith.constant 0.000000e+00 : f32
    %45 = vector.broadcast %cst_37 : f32 to vector<2x32xf32>
    %46 = arith.maximumf %44, %45 : vector<2x32xf32>
    %c0_38 = arith.constant 0 : index
    %c0_39 = arith.constant 0 : index
    %c0_40 = arith.constant 0 : index
    %47 = vector.load %arg5[%c0_38, %c0_39, %c0_40] : memref<3x8x32xf32, #tpu.memory_space<vmem>>, vector<1x8x32xf32>
    %48 = vector.shape_cast %47 : vector<1x8x32xf32> to vector<8x32xf32>
    %c1_41 = arith.constant 1 : index
    %c0_42 = arith.constant 0 : index
    %c0_43 = arith.constant 0 : index
    %49 = vector.load %arg5[%c1_41, %c0_42, %c0_43] : memref<3x8x32xf32, #tpu.memory_space<vmem>>, vector<1x8x32xf32>
    %50 = vector.shape_cast %49 : vector<1x8x32xf32> to vector<8x32xf32>
    %51 = math.exp %50 : vector<8x32xf32>
    %c2_44 = arith.constant 2 : index
    %c0_45 = arith.constant 0 : index
    %c0_46 = arith.constant 0 : index
    %52 = vector.load %arg5[%c2_44, %c0_45, %c0_46] : memref<3x8x32xf32, #tpu.memory_space<vmem>>, vector<1x8x32xf32>
    %53 = vector.shape_cast %52 : vector<1x8x32xf32> to vector<8x32xf32>
    %54 = arith.mulf %51, %53 : vector<8x32xf32>
    %55 = arith.addf %48, %54 : vector<8x32xf32>
    %c0_47 = arith.constant 0 : index
    %c0_48 = arith.constant 0 : index
    %c0_49 = arith.constant 0 : index
    %56 = vector.load %arg6[%c0_47, %c0_48, %c0_49] : memref<3x1x8xf32, #tpu.memory_space<vmem>>, vector<1x1x8xf32>
    %57 = vector.shape_cast %56 : vector<1x1x8xf32> to vector<1x8xf32>
    %c1_50 = arith.constant 1 : index
    %c0_51 = arith.constant 0 : index
    %c0_52 = arith.constant 0 : index
    %58 = vector.load %arg6[%c1_50, %c0_51, %c0_52] : memref<3x1x8xf32, #tpu.memory_space<vmem>>, vector<1x1x8xf32>
    %59 = vector.shape_cast %58 : vector<1x1x8xf32> to vector<1x8xf32>
    %60 = math.exp %59 : vector<1x8xf32>
    %c2_53 = arith.constant 2 : index
    %c0_54 = arith.constant 0 : index
    %c0_55 = arith.constant 0 : index
    %61 = vector.load %arg6[%c2_53, %c0_54, %c0_55] : memref<3x1x8xf32, #tpu.memory_space<vmem>>, vector<1x1x8xf32>
    %62 = vector.shape_cast %61 : vector<1x1x8xf32> to vector<1x8xf32>
    %63 = arith.mulf %60, %62 : vector<1x8xf32>
    %64 = arith.addf %57, %63 : vector<1x8xf32>
    %cst_56 = arith.constant dense<0.000000e+00> : vector<2x8xf32>
    %65 = tpu.matmul %46, %55, %cst_56 {dimension_numbers = #tpu.dot_dimension_numbers<[1], [1], [0], [0], [0, 0, 1, 0], [], []>} : vector<2x32xf32>, vector<8x32xf32>, vector<2x8xf32> -> vector<2x8xf32>
    %66 = vector.broadcast %64 : vector<1x8xf32> to vector<2x8xf32>
    %67 = arith.addf %65, %66 : vector<2x8xf32>
    %c0_57 = arith.constant 0 : index
    %c0_58 = arith.constant 0 : index
    %68 = vector.load %arg7[%c0_57, %c0_58] : memref<2x8xf32, #tpu.memory_space<vmem>>, vector<2x8xf32>
    tpu.vector_store %arg7[%c0_57, %c0_58], %67 {strides = array<i32>} : memref<2x8xf32, #tpu.memory_space<vmem>>, vector<2x8xf32>,
    return
  }
}

</mosaic_0001>

<bundles_post_ra>
// kernel: tpu_custom_call.1
= control target key start
LH: loop header
LB: loop body
LE: loop exit
PB: predicated region body
PF: predicated region fallthrough
CT: control target
= control target key end

     0   :  { %12 = vsyncpa [#allocation3], 0  ;;  %s1394_s0 = inlined_call_operand.hbm [shape: f32[2,1024], index: 0, kind: input, shape index: {}]   ;;  %s1395_s1 = inlined_call_operand.hbm [shape: f32[3,32,1024], index: 1, kind: input, shape index: {}]   ;;  %s1396_s2 = inlined_call_operand.vmem [shape: f32[3,1,32], index: 2, kind: input, shape index: {}]   ;;  %s1397_s3 = inlined_call_operand.hbm [shape: f32[3,32,32], index: 3, kind: input, shape index: {}]   ;;  %s1398_s4 = inlined_call_operand.vmem [shape: f32[3,1,32], index: 4, kind: input, shape index: {}]   ;;  %s1399_s5 = inlined_call_operand.hbm [shape: f32[3,8,32], index: 5, kind: input, shape index: {}]   ;;  %s1400_s6 = inlined_call_operand.vmem [shape: f32[3,1,8], index: 6, kind: input, shape index: {}]   ;;  %s1401_s7 = inlined_call_operand.hbm [shape: f32[2,8], index: 7, kind: output, shape index: {}]  }
   0x1   :  { %13 = vsyncpa [#allocation6], 0 }
   0x2   :  { %14 = vsyncpa [#allocation9], 0 }
   0x3   :  { %15 = vsyncpa [#allocation4], 0  ;;  %s1194_s24 = smov [#allocation5]   ;;  %s1076_s28 = scalar_lea.hbm %s1395_s1, 12288 }
   0x4   :  { %s31_s25 = sshll.u32 %s1194_s24, 4  ;;  %p1077_p0 = scmp.ne.s32.totalorder %s1395_s1, %s1076_s28  ;;  %s32_s25 = int_to_ptr.vmem [resolvable:$true] %s31_s25 }
   0x5   :  { %p1080_p1 = scmp.lt.u32.totalorder %s1076_s28, %s1395_s1 }
   0x7   :  { %p1082_p2 = pnand %p1080_p1, %p1077_p0 }
   0x9   :  { %1085 = shalt.err (!%p1082_p2)
}
   0xa   :  { %s1086_s10 = scalar_lea.vmem %s32_s25, 12288  ;;  %p1091_p4 = scmp.lt.s32.totalorder %s32_s25, %s32_s25 }
   0xb   :  { %p1087_p3 = scmp.ne.s32.totalorder %s32_s25, %s1086_s10  ;;  %p1092_p5 = scmp.lt.s32.totalorder %s1086_s10, %s1086_s10 }
   0xd   :  { %p1093_p6 = por %p1092_p5, %p1091_p4 }
   0xf   :  { %p1094_p7 = pnand %p1093_p6, %p1087_p3 }
  0x11   :  { %1097 = shalt.err (!%p1094_p7)
}
  0x12   :  { %s1195_s11 = smov 1024   ;;  %s1196_s12 = smov 64  }
  0x13   :  { %37 = dma.hbm_to_vmem [thread:$0]  %s1395_s1, 12288, %s32_s25, [#allocation6], %s1195_s11, %s1195_s11, %s1196_s12  }
  0x14   :  { %s1197_s15 = smov [#allocation2]   ;;  %s1198_s17 = smov [#allocation7]  }
  0x15   :  { %s22_s16 = sshll.u32 %s1197_s15, 4  ;;  %s45_s18 = sshll.u32 %s1198_s17, 4  ;;  %s23_s16 = int_to_ptr.vmem [resolvable:$true] %s22_s16  ;;  %s46_s18 = int_to_ptr.vmem [resolvable:$true] %s45_s18 }
  0x16   :  { %s1098_s21 = scalar_lea.hbm %s1394_s0, 256 }
  0x17   :  { %p1099_p8 = scmp.ne.s32.totalorder %s1394_s0, %s1098_s21  ;;  %p1102_p9 = scmp.lt.u32.totalorder %s1098_s21, %s1394_s0 }
  0x19   :  { %p1104_p10 = pnand %p1102_p9, %p1099_p8 }
  0x1b   :  { %1107 = shalt.err (!%p1104_p10)
}
  0x1c   :  { %s1108_s1 = scalar_lea.vmem %s23_s16, 256  ;;  %p1113_p12 = scmp.lt.s32.totalorder %s23_s16, %s23_s16 }
  0x1d   :  { %p1109_p11 = scmp.ne.s32.totalorder %s23_s16, %s1108_s1  ;;  %p1114_p13 = scmp.lt.s32.totalorder %s1108_s1, %s1108_s1 }
  0x1f   :  { %p1115_p0 = por %p1114_p13, %p1113_p12 }
  0x21   :  { %p1116_p1 = pnand %p1115_p0, %p1109_p11 }
  0x23   :  { %1119 = shalt.err (!%p1116_p1)
}
  0x24   :  { %25 = dma.hbm_to_vmem [thread:$0]  %s1394_s0, 256, %s23_s16, [#allocation3]  }
  0x25   :  { %s1120_s30 = scalar_lea.hbm %s1397_s3, 1536 }
  0x26   :  { %p1121_p2 = scmp.ne.s32.totalorder %s1397_s3, %s1120_s30  ;;  %p1124_p3 = scmp.lt.u32.totalorder %s1120_s30, %s1397_s3 }
  0x28   :  { %p1126_p4 = pnand %p1124_p3, %p1121_p2 }
  0x2a   :  { %1129 = shalt.err (!%p1126_p4)
}
  0x2b   :  { %s1130_s12 = scalar_lea.vmem %s46_s18, 1536  ;;  %p1135_p6 = scmp.lt.s32.totalorder %s46_s18, %s46_s18 }
  0x2c   :  { %p1131_p5 = scmp.ne.s32.totalorder %s46_s18, %s1130_s12  ;;  %p1136_p7 = scmp.lt.s32.totalorder %s1130_s12, %s1130_s12 }
  0x2e   :  { %p1137_p8 = por %p1136_p7, %p1135_p6 }
  0x30   :  { %p1138_p9 = pnand %p1137_p8, %p1131_p5 }
  0x32   :  { %1141 = shalt.err (!%p1138_p9)
}
  0x33   :  { %s1199_s0 = smov 128   ;;  %s1200_s13 = smov 8  }
  0x34   :  { %51 = dma.hbm_to_vmem [thread:$0]  %s1397_s3, 1536, %s46_s18, [#allocation6], %s1199_s0, %s1199_s0, %s1200_s13  }
  0x35   :  { %s1201_s16 = smov [#allocation8]   ;;  %s1142_s21 = scalar_lea.hbm %s1399_s5, 384 }
  0x36   :  { %s59_s17 = sshll.u32 %s1201_s16, 4  ;;  %p1143_p10 = scmp.ne.s32.totalorder %s1399_s5, %s1142_s21  ;;  %s60_s17 = int_to_ptr.vmem [resolvable:$true] %s59_s17 }
  0x37   :  { %p1146_p11 = scmp.lt.u32.totalorder %s1142_s21, %s1399_s5 }
  0x39   :  { %p1148_p12 = pnand %p1146_p11, %p1143_p10 }
  0x3b   :  { %1151 = shalt.err (!%p1148_p12)
}
  0x3c   :  { %s1152_s1 = scalar_lea.vmem %s60_s17, 384  ;;  %p1157_p0 = scmp.lt.s32.totalorder %s60_s17, %s60_s17 }
  0x3d   :  { %p1153_p13 = scmp.ne.s32.totalorder %s60_s17, %s1152_s1  ;;  %p1158_p1 = scmp.lt.s32.totalorder %s1152_s1, %s1152_s1 }
  0x3f   :  { %p1159_p2 = por %p1158_p1, %p1157_p0 }
  0x41   :  { %p1160_p3 = pnand %p1159_p2, %p1153_p13 }
  0x43   :  { %1163 = shalt.err (!%p1160_p3)
}
  0x44   :  { %65 = dma.hbm_to_vmem [thread:$0]  %s1399_s5, 384, %s60_s17, [#allocation9], %s1199_s0, %s1199_s0, %s1200_s13  }
  0x45   :  { %1186 = dma.done.wait [#allocation3], 256  }
  0x46   :  { %1187 = vsyncadd [#allocation3], 4294967040 }
  0x47   :  { %1188 = dma.done.wait [#allocation6], 13824  }
  0x48   :  { %1189 = vsyncadd [#allocation6], 4294953472 }
  0x49   :  { %1190 = dma.done.wait [#allocation9], 384  }
  0x4a   :  { %1191 = vsyncadd [#allocation9], 4294966912  ;;  %v318_v0 = vlaneseq  ;;  %v1202_v1 = vmov 1983009808   ;;  %v118_v3 = vld [vmem:[#allocation5 + $0x118] sm:$0xff]  ;;  %v117_v7 = vld [vmem:[#allocation5 + $0x110] sm:$0xff] }
  0x4b   :  { %v327_v2 = vunpack.c.l.s4 %v1202_v1  ;;  %v126_v4 = vld [vmem:[#allocation5 + $0x158] sm:$0xff]  ;;  %v153_v5 = vmul.f32 1.442695, %v118_v3  ;;  %v125_v8 = vld [vmem:[#allocation5 + $0x150] sm:$0xff]  ;;  %v151_v9 = vmul.f32 1.442695, %v117_v7 }
  0x4c   :  { %v169_v6 = vmul.f32 1.442695, %v126_v4  ;;  %v1295_v10 = vshrl.u32 %v318_v0, 7  ;;  %v167_v12 = vmul.f32 1.442695, %v125_v8  ;;  %v134_v13 = vld [vmem:[#allocation5 + $0x198] sm:$0xff] }
  0x4d   :  { %996 = vpow2.f32 %v153_v5  ;;  %v328_v11 = vunpack.c.0.s8 %v327_v2  ;;  %v142_v14 = vld [vmem:[#allocation5 + $0x1d8] sm:$0xff]  ;;  %v185_v15 = vmul.f32 1.442695, %v134_v13  ;;  %v133_v17 = vld [vmem:[#allocation5 + $0x190] sm:$0xff]  ;;  %v120_v24 = vld [vmem:[#allocation5 + $0x128] sm:$0xff]  ;;  %vm693_vm0 = vcmask 261120  }
  0x4e   :  { %998 = vpow2.f32 %v169_v6  ;;  %v201_v16 = vmul.f32 1.442695, %v142_v14  ;;  %v141_v18 = vld [vmem:[#allocation5 + $0x1d0] sm:$0xff]  ;;  %v183_v19 = vmul.f32 1.442695, %v133_v17  ;;  %v128_v25 = vld [vmem:[#allocation5 + $0x168] sm:$0xff]  ;;  %vm1340_vm1 = vmpackc.low %vm693_vm0, %vm693_vm0 }
  0x4f   :  { %1000 = vpow2.f32 %v151_v9  ;;  %v1298_v20 = vsub.s32 %v328_v11, %v1295_v10  ;;  %v199_v21 = vmul.f32 1.442695, %v141_v18  ;;  %v80_v22 = vld [vmem:[#allocation2] sm:$0xff]  ;;  %v157_v27 = vmul.f32 1.442695, %v120_v24  ;;  %v215_v29 = vld [vmem:[#allocation5 + $0x218] sm:$0xff] }
  0x50   :  { %1002 = vpow2.f32 %v167_v12  ;;  %v325_v23 = vcombine.high %v80_v22, %v80_v22  ;;  %v173_v28 = vmul.f32 1.442695, %v128_v25  ;;  %v119_v31 = vld [vmem:[#allocation5 + $0x120] sm:$0xff]  ;;  %v223_v34 = vld [vmem:[#allocation5 + $0x258] sm:$0xff]  ;;  %v214_v39 = vld [vmem:[#allocation5 + $0x210] sm:$0xff]  ;;  %vm1204_vm2 = vmmov 0  }
  0x51   :  { %1004 = vpow2.f32 %v185_v15  ;;  %v1301_v26 = vrot.slane %v80_v22, %v1298_v20  ;;  %v127_v32 = vld [vmem:[#allocation5 + $0x160] sm:$0xff]  ;;  %v155_v35 = vmul.f32 1.442695, %v119_v31  ;;  %v85_v38 = vld [vmem:[#allocation5 + $0x18] sm:$0xff]  ;;  %v136_v41 = vld [vmem:[#allocation5 + $0x1a8] sm:$0xff]  ;;  %s1206_s17 = smov [#allocation10]  }
  0x52   :  { %1006 = vpow2.f32 %v201_v16  ;;  %v1304_v30 = vrot.slane %v325_v23, %v1298_v20  ;;  %v171_v36 = vmul.f32 1.442695, %v127_v32  ;;  %v93_v43 = vld [vmem:[#allocation5 + $0x58] sm:$0xff]  ;;  %v222_v45 = vld [vmem:[#allocation5 + $0x250] sm:$0xff]  ;;  %v144_v46 = vld [vmem:[#allocation5 + $0x1e8] sm:$0xff]  ;;  %s888_s19 = sshll.u32 %s1206_s17, 4  ;;  %s889_s19 = int_to_ptr.vmem [resolvable:$true] %s888_s19 }
  0x53   :  { %1008 = vpow2.f32 %v183_v19  ;;  %v340_v33 = vcombine.high %v1301_v26, %v1301_v26  ;;  %v189_v47 = vmul.f32 1.442695, %v136_v41  ;;  %v84_v50 = vld [vmem:[#allocation5 + $0x10] sm:$0xff]  ;;  %v231_v51 = vld [vmem:[#allocation5 + $0x298] sm:$0xff]  ;;  %v205_v52 = vmul.f32 1.442695, %v144_v46  ;;  %p1169_p5 = scmp.lt.s32.totalorder %s889_s19, %s889_s19 }
  0x54   :  { %1010 = vpow2.f32 %v199_v21  ;;  %v341_v40 = vcombine.high %v1304_v30, %v1304_v30  ;;  %v135_v53 = vld [vmem:[#allocation5 + $0x1a0] sm:$0xff]  ;;  %v92_v56 = vld [vmem:[#allocation5 + $0x50] sm:$0xff]  ;;  %v239_v58 = vld [vmem:[#allocation5 + $0x2d8] sm:$0xff]  ;;  %vm880_vm3 = vcmask 58368   ;;  %s1164_s20 = scalar_lea.vmem %s889_s19, 32 }
  0x55   :  { %1012 = vpow2.f32 %v157_v27  ;;  %431 = vmatprep.mubr.f32.mxu1 %v340_v33  ;;  %v143_v59 = vld [vmem:[#allocation5 + $0x1e0] sm:$0xff]  ;;  %v187_v60 = vmul.f32 1.442695, %v135_v53  ;;  %v101_v0 = vld [vmem:[#allocation5 + $0x98] sm:$0xff]  ;;  %v230_v1 = vld [vmem:[#allocation5 + $0x290] sm:$0xff]  ;;  %p1165_p4 = scmp.ne.s32.totalorder %s889_s19, %s1164_s20  ;;  %p1170_p6 = scmp.lt.s32.totalorder %s1164_s20, %s1164_s20 }
  0x56   :  { %1014 = vpow2.f32 %v173_v28  ;;  %501 = vmatprep.mubr.f32.mxu0 %v341_v40  ;;  %v203_v2 = vmul.f32 1.442695, %v143_v59  ;;  %v116_v3 = vld [vmem:[#allocation5 + $0x108] sm:$0xff]  ;;  %v109_v6 = vld [vmem:[#allocation5 + $0xd8] sm:$0xff]  ;;  %v238_v8 = vld [vmem:[#allocation5 + $0x2d0] sm:$0xff] }
  0x57   :  { %v997_v37 = vpop.eup %996  ;;  %1016 = vpow2.f32 %v155_v35  ;;  %v124_v9 = vld [vmem:[#allocation5 + $0x148] sm:$0xff]  ;;  %v149_v11 = vmul.f32 1.442695, %v116_v3  ;;  %v100_v16 = vld [vmem:[#allocation5 + $0x90] sm:$0xff]  ;;  %v115_v17 = vld [vmem:[#allocation5 + $0x100] sm:$0xff]  ;;  %p1171_p7 = por %p1170_p6, %p1169_p5 }
  0x58   :  { %v999_v42 = vpop.eup %998  ;;  %v247_v44 = vmul.f32 %v997_v37, %v215_v29  ;;  %1018 = vpow2.f32 %v171_v36  ;;  %v108_v21 = vld [vmem:[#allocation5 + $0xd0] sm:$0xff]  ;;  %v217_v23 = vld [vmem:[#allocation5 + $0x228] sm:$0xff]  ;;  %v165_v24 = vmul.f32 1.442695, %v124_v9  ;;  %v123_v25 = vld [vmem:[#allocation5 + $0x140] sm:$0xff] }
  0x59   :  { %v1001_v48 = vpop.eup %1000  ;;  %v255_v49 = vmul.f32 %v999_v42, %v223_v34  ;;  %1020 = vpow2.f32 %v189_v47  ;;  %v87_v31 = vld [vmem:[#allocation5 + $0x28] sm:$0xff]  ;;  %v216_v33 = vld [vmem:[#allocation5 + $0x220] sm:$0xff]  ;;  %v147_v34 = vmul.f32 1.442695, %v115_v17  ;;  %v163_v37 = vmul.f32 1.442695, %v123_v25  ;;  %p1172_p8 = pnand %p1171_p7, %p1165_p4 }
  0x5a   :  { %v1003_v54 = vpop.eup %1002  ;;  %v279_v55 = vadd.f32 %v247_v44, %v85_v38  ;;  %v246_v57 = vmul.f32 %v1001_v48, %v214_v39  ;;  %1022 = vpow2.f32 %v205_v52  ;;  %v225_v32 = vld [vmem:[#allocation5 + $0x268] sm:$0xff]  ;;  %v1312_v38 = vld [vmem:[#allocation2 + $0x8] sm:$0xff]  ;;  %v224_v46 = vld [vmem:[#allocation5 + $0x260] sm:$0xff] }
  0x5b   :  { %v1005_v61 = vpop.eup %1004  ;;  %v287_v62 = vadd.f32 %v255_v49, %v93_v43  ;;  %v254_v63 = vmul.f32 %v1003_v54, %v222_v45  ;;  %1024 = vpow2.f32 %v187_v60  ;;  %v122_v39 = vld [vmem:[#allocation5 + $0x138] sm:$0xff]  ;;  %v95_v44 = vld [vmem:[#allocation5 + $0x68] sm:$0xff]  ;;  %v129_v52 = vld [vmem:[#allocation5 + $0x170] sm:$0xff]  ;;  %v1316_v59 = vrot.slane %v1312_v38, %v1298_v20 }
  0x5c   :  { %v1007_v4 = vpop.eup %1006  ;;  %v278_v5 = vadd.f32 %v246_v57, %v84_v50  ;;  %v263_v7 = vmul.f32 %v1005_v61, %v231_v51  ;;  %1026 = vpow2.f32 %v203_v2  ;;  %v130_v40 = vld [vmem:[#allocation5 + $0x178] sm:$0xff]  ;;  %v233_v49 = vld [vmem:[#allocation5 + $0x2a8] sm:$0xff]  ;;  %v161_v50 = vmul.f32 1.442695, %v122_v39  ;;  %v121_v51 = vld [vmem:[#allocation5 + $0x130] sm:$0xff] }
  0x5d   :  { %v1009_v12 = vpop.eup %1008  ;;  %v943_v13 = vpack.c.bf16 %v287_v62, %v279_v55  ;;  %v286_v14 = vadd.f32 %v254_v63, %v92_v56  ;;  %v271_v15 = vmul.f32 %v1007_v4, %v239_v58  ;;  %1028 = vpow2.f32 %v149_v11  ;;  %v86_v55 = vld [vmem:[#allocation5 + $0x20] sm:$0xff]  ;;  %v241_v58 = vld [vmem:[#allocation5 + $0x2e8] sm:$0xff] }
  0x5e   :  { %v1011_v18 = vpop.eup %1010  ;;  %v295_v19 = vadd.f32 %v263_v7, %v101_v0  ;;  %v262_v22 = vmul.f32 %v1009_v12, %v230_v1  ;;  %1030 = vpow2.f32 %v165_v24  ;;  %v94_v56 = vld [vmem:[#allocation5 + $0x60] sm:$0xff]  ;;  %v177_v60 = vmul.f32 1.442695, %v130_v40  ;;  %v132_v1 = vld [vmem:[#allocation5 + $0x188] sm:$0xff] }
  0x5f   :  { %944 = vmatprep.subr.bf16.mxu0 %v943_v13  ;;  %v945_v27 = vpack.c.bf16 %v286_v14, %v278_v5  ;;  %v303_v28 = vadd.f32 %v271_v15, %v109_v6  ;;  %v270_v29 = vmul.f32 %v1011_v18, %v238_v8  ;;  %v1013_v35 = vpop.eup %1012  ;;  %1032 = vpow2.f32 %v147_v34  ;;  %v103_v4 = vld [vmem:[#allocation5 + $0xa8] sm:$0xff]  ;;  %v232_v14 = vld [vmem:[#allocation5 + $0x2a0] sm:$0xff] }
  0x60   :  { %v1310_v36 = vadd.f32 %v262_v22, %v100_v16  ;;  %v1015_v41 = vpop.eup %1014  ;;  %v249_v45 = vmul.f32 %v1013_v35, %v217_v23  ;;  %1034 = vpow2.f32 %v163_v37  ;;  %v159_v0 = vmul.f32 1.442695, %v121_v51  ;;  %v140_v7 = vld [vmem:[#allocation5 + $0x1c8] sm:$0xff]  ;;  %v131_v16 = vld [vmem:[#allocation5 + $0x180] sm:$0xff] }
  0x61   :  { %946 = vmatpush1.bf16.xpose.msra.mxu0 %v945_v27  ;;  %v947_v42 = vpack.c.bf16 %v303_v28, %v295_v19  ;;  %v302_v43 = vadd.f32 %v270_v29, %v108_v21  ;;  %v1017_v47 = vpop.eup %1016  ;;  %v257_v48 = vmul.f32 %v1015_v41, %v225_v32  ;;  %1036 = vpow2.f32 %v161_v50  ;;  %v213_v15 = vld [vmem:[#allocation5 + $0x208] sm:$0xff]  ;;  %v139_v21 = vld [vmem:[#allocation5 + $0x1c0] sm:$0xff]  ;;  %v138_v29 = vld [vmem:[#allocation5 + $0x1b8] sm:$0xff] }
  0x62   :  { %v1019_v53 = vpop.eup %1018  ;;  %v281_v54 = vadd.f32 %v249_v45, %v87_v31  ;;  %v248_v57 = vmul.f32 %v1017_v47, %v216_v33  ;;  %1038 = vpow2.f32 %v177_v60  ;;  %v175_v6 = vmul.f32 1.442695, %v129_v52  ;;  %v111_v18 = vld [vmem:[#allocation5 + $0xe8] sm:$0xff]  ;;  %v240_v31 = vld [vmem:[#allocation5 + $0x2e0] sm:$0xff]  ;;  %v145_v50 = vld [vmem:[#allocation5 + $0x1f0] sm:$0xff] }
  0x63   :  { %948 = vmatprep.subr.bf16.mxu0 %v947_v42  ;;  %v1021_v61 = vpop.eup %1020  ;;  %v289_v62 = vadd.f32 %v257_v48, %v95_v44  ;;  %v256_v63 = vmul.f32 %v1019_v53, %v224_v46  ;;  %v949_v3 = vpack.c.bf16 %v302_v43, %v1310_v36  ;;  %1040 = vpow2.f32 %v159_v0  ;;  %v83_v24 = vld [vmem:[#allocation5 + $0x8] sm:$0xff]  ;;  %v212_v34 = vld [vmem:[#allocation5 + $0x200] sm:$0xff]  ;;  %v146_v36 = vld [vmem:[#allocation5 + $0x1f8] sm:$0xff] }
  0x64   :  { %v1023_v2 = vpop.eup %1022  ;;  %v265_v5 = vmul.f32 %v1021_v61, %v233_v49  ;;  %v1319_v11 = vadd.f32 %v248_v57, %v86_v55  ;;  %v181_v19 = vmul.f32 1.442695, %v132_v1  ;;  %v221_v25 = vld [vmem:[#allocation5 + $0x248] sm:$0xff]  ;;  %v357_v27 = vcombine.high %v1316_v59, %v1316_v59  ;;  %v220_v42 = vld [vmem:[#allocation5 + $0x240] sm:$0xff]  ;;  %v137_v44 = vld [vmem:[#allocation5 + $0x1b0] sm:$0xff] }
  0x65   :  { %v1025_v8 = vpop.eup %1024  ;;  %v951_v9 = vpack.c.bf16 %v289_v62, %v281_v54  ;;  %v1321_v12 = vadd.f32 %v256_v63, %v94_v56  ;;  %v273_v13 = vmul.f32 %v1023_v2, %v241_v58  ;;  %1042 = vpow2.f32 %v175_v6  ;;  %v91_v41 = vld [vmem:[#allocation5 + $0x48] sm:$0xff]  ;;  %v82_v48 = vld [vmem:[#allocation5] sm:$0xff]  ;;  %v219_v55 = vld [vmem:[#allocation5 + $0x238] sm:$0xff] }
  0x66   :  { %v1027_v17 = vpop.eup %1026  ;;  %v1323_v23 = vadd.f32 %v265_v5, %v103_v4  ;;  %v197_v28 = vmul.f32 1.442695, %v140_v7  ;;  %v264_v32 = vmul.f32 %v1025_v8, %v232_v14  ;;  %1044 = vpow2.f32 %v181_v19  ;;  %v90_v53 = vld [vmem:[#allocation5 + $0x40] sm:$0xff]  ;;  %v227_v60 = vld [vmem:[#allocation5 + $0x278] sm:$0xff]  ;;  %v654_v5 = vld [vmem:[#allocation7 + $0x28] sm:$0xff] }
  0x67   :  { %v1029_v22 = vpop.eup %1028  ;;  %v179_v35 = vmul.f32 1.442695, %v131_v16  ;;  %v953_v39 = vpack.c.bf16 %v1321_v12, %v1319_v11  ;;  %v305_v40 = vadd.f32 %v273_v13, %v111_v18  ;;  %v195_v43 = vmul.f32 1.442695, %v139_v21  ;;  %v653_v62 = vld [vmem:[#allocation7 + $0x20] sm:$0xff]  ;;  %v97_v11 = vld [vmem:[#allocation5 + $0x78] sm:$0xff] }
  0x68   :  { %v245_v33 = vmul.f32 %v1029_v22, %v213_v15  ;;  %v1031_v37 = vpop.eup %1030  ;;  %1046 = vpow2.f32 %v197_v28  ;;  %v193_v49 = vmul.f32 1.442695, %v138_v29  ;;  %v272_v52 = vmul.f32 %v1027_v17, %v240_v31  ;;  %v102_v1 = vld [vmem:[#allocation5 + $0xa0] sm:$0xff]  ;;  %v218_v19 = vld [vmem:[#allocation5 + $0x230] sm:$0xff]  ;;  %v229_v21 = vld [vmem:[#allocation5 + $0x288] sm:$0xff] }
  0x69   :  { %950 = vmatpush1.bf16.xpose.msra.mxu0 %v949_v3  ;;  %v1033_v45 = vpop.eup %1032  ;;  %v253_v46 = vmul.f32 %v1031_v37, %v221_v25  ;;  %1048 = vpow2.f32 %v179_v35  ;;  %v209_v56 = vmul.f32 1.442695, %v146_v36  ;;  %v191_v61 = vmul.f32 1.442695, %v137_v44  ;;  %v110_v2 = vld [vmem:[#allocation5 + $0xe0] sm:$0xff]  ;;  %v226_v25 = vld [vmem:[#allocation5 + $0x270] sm:$0xff] }
  0x6a   :  { %952 = vmatprep.subr.bf16.mxu0 %v951_v9  ;;  %v277_v47 = vadd.f32 %v245_v33, %v83_v24  ;;  %v1035_v51 = vpop.eup %1034  ;;  %v244_v54 = vmul.f32 %v1033_v45, %v212_v34  ;;  %1050 = vpow2.f32 %v195_v43  ;;  %v955_v0 = vpack.c.bf16 %v305_v40, %v1323_v23  ;;  %v89_v9 = vld [vmem:[#allocation5 + $0x38] sm:$0xff]  ;;  %v237_v28 = vld [vmem:[#allocation5 + $0x2c8] sm:$0xff]  ;;  %v236_v37 = vld [vmem:[#allocation5 + $0x2c0] sm:$0xff] }
  0x6b   :  { %v285_v57 = vadd.f32 %v253_v46, %v91_v41  ;;  %v252_v58 = vmul.f32 %v1035_v51, %v220_v42  ;;  %1052 = vpow2.f32 %v193_v49  ;;  %v1037_v63 = vpop.eup %1036  ;;  %v207_v4 = vmul.f32 1.442695, %v145_v50  ;;  %v99_v31 = vld [vmem:[#allocation5 + $0x88] sm:$0xff]  ;;  %v88_v41 = vld [vmem:[#allocation5 + $0x30] sm:$0xff]  ;;  %v98_v44 = vld [vmem:[#allocation5 + $0x80] sm:$0xff] }
  0x6c   :  { %v276_v3 = vadd.f32 %v244_v54, %v82_v48  ;;  %1054 = vpow2.f32 %v209_v56  ;;  %v1039_v6 = vpop.eup %1038  ;;  %v251_v12 = vmul.f32 %v1037_v63, %v219_v55  ;;  %v657_v14 = vmul.f32 1.442695, %v653_v62  ;;  %v107_v35 = vld [vmem:[#allocation5 + $0xc8] sm:$0xff]  ;;  %v235_v45 = vld [vmem:[#allocation5 + $0x2b8] sm:$0xff]  ;;  %v96_v48 = vld [vmem:[#allocation5 + $0x70] sm:$0xff] }
  0x6d   :  { %v935_v7 = vpack.c.bf16 %v285_v57, %v277_v47  ;;  %v284_v8 = vadd.f32 %v252_v58, %v90_v53  ;;  %1056 = vpow2.f32 %v191_v61  ;;  %v259_v13 = vmul.f32 %v1039_v6, %v227_v60  ;;  %v1041_v15 = vpop.eup %1040  ;;  %v106_v50 = vld [vmem:[#allocation5 + $0xc0] sm:$0xff]  ;;  %v105_v56 = vld [vmem:[#allocation5 + $0xb8] sm:$0xff]  ;;  %v234_v6 = vld [vmem:[#allocation5 + $0x2b0] sm:$0xff] }
  0x6e   :  { %1058 = vpow2.f32 %v207_v4  ;;  %v296_v16 = vadd.f32 %v264_v32, %v102_v1  ;;  %v304_v17 = vadd.f32 %v272_v52, %v110_v2  ;;  %v659_v22 = vmul.f32 1.442695, %v654_v5  ;;  %v228_v32 = vld [vmem:[#allocation5 + $0x280] sm:$0xff]  ;;  %v243_v52 = vld [vmem:[#allocation5 + $0x2f8] sm:$0xff] }
  0x6f   :  { %936 = vmatprep.subr.bf16.mxu1 %v935_v7  ;;  %v937_v18 = vpack.c.bf16 %v284_v8, %v276_v3  ;;  %v1043_v23 = vpop.eup %1042  ;;  %v283_v24 = vadd.f32 %v251_v12, %v89_v9  ;;  %1060 = vpow2.f32 %v657_v14  ;;  %v250_v34 = vmul.f32 %v1041_v15, %v218_v19  ;;  %v113_v60 = vld [vmem:[#allocation5 + $0xf8] sm:$0xff]  ;;  %v242_v7 = vld [vmem:[#allocation5 + $0x2f0] sm:$0xff]  ;;  %v666_v8 = vld [vmem:[#allocation7 + $0x40] sm:$0xff] }
  0x70   :  { %502 = vmatmul.mubr.f32.vlgmr.msra.gmra.mrb[0].mxu0 %v1304_v30  ;;  %v291_v30 = vadd.f32 %v259_v13, %v97_v11  ;;  %v1045_v29 = vpop.eup %1044  ;;  %1062 = vpow2.f32 %v659_v22  ;;  %v258_v42 = vmul.f32 %v1043_v23, %v226_v25  ;;  %v667_v12 = vld [vmem:[#allocation7 + $0x48] sm:$0xff]  ;;  %v648_v15 = vld [vmem:[#allocation7] sm:$0xff]  ;;  %v104_v23 = vld [vmem:[#allocation5 + $0xb0] sm:$0xff] }
  0x71   :  { %954 = vmatpush1.bf16.xpose.msra.mxu0 %v953_v39  ;;  %571 = vmatprep.mubr.f32.mxu0 %v357_v27  ;;  %v261_v36 = vmul.f32 %v1045_v29, %v229_v21  ;;  %v342_v39 = vcombine.high %v1312_v38, %v1312_v38  ;;  %v957_v27 = vpack.c.bf16 %v304_v17, %v296_v16  ;;  %v649_v19 = vld [vmem:[#allocation7 + $0x8] sm:$0xff] }
  0x72   :  { %956 = vmatprep.subr.bf16.mxu0 %v955_v0  ;;  %938 = vmatpush1.bf16.xpose.msra.mxu1 %v937_v18  ;;  %v1047_v33 = vpop.eup %1046  ;;  %v959_v47 = vpack.c.bf16 %v291_v30, %v283_v24  ;;  %v282_v38 = vadd.f32 %v250_v34, %v88_v41  ;;  %v290_v0 = vadd.f32 %v258_v42, %v96_v48  ;;  %v112_v24 = vld [vmem:[#allocation5 + $0xf0] sm:$0xff]  ;;  %v1203_v30 = vmov 0.0|0.0  }
  0x73   :  { %v1049_v40 = vpop.eup %1048  ;;  %v269_v43 = vmul.f32 %v1047_v33, %v237_v28  ;;  %v293_v49 = vadd.f32 %v261_v36, %v99_v31  ;;  %v356_v62 = vrot.slane %v342_v39, %v1298_v20  ;;  %v656_v36 = vld [vmem:[#allocation7 + $0x38] sm:$0xff]  ;;  %v650_v42 = vld [vmem:[#allocation7 + $0x10] sm:$0xff] }
  0x74   :  { %v1051_v46 = vpop.eup %1050  ;;  %v260_v51 = vmul.f32 %v1049_v40, %v228_v32  ;;  %v961_v16 = vpack.c.bf16 %v290_v0, %v282_v38  ;;  %v663_v39 = vmul.f32 1.442695, %v656_v36  ;;  %v668_v40 = vld [vmem:[#allocation7 + $0x50] sm:$0xff]  ;;  %v320_v38 = vsub.s32 0, %v1295_v10 }
  0x75   :  { %v1053_v53 = vpop.eup %1052  ;;  %v301_v54 = vadd.f32 %v269_v43, %v107_v35  ;;  %v268_v55 = vmul.f32 %v1051_v46, %v236_v37  ;;  %v358_v14 = vcombine.high %v356_v62, %v356_v62  ;;  %v901_v10 = vld [vmem:[%s1398_s4 + $0x1] sm:$0x1] }
  0x76   :  { %v1055_v57 = vpop.eup %1054  ;;  %v292_v58 = vadd.f32 %v260_v51, %v98_v44  ;;  %v267_v61 = vmul.f32 %v1053_v53, %v235_v45  ;;  %v651_v44 = vld [vmem:[#allocation7 + $0x18] sm:$0xff]  ;;  %v900_v53 = vld [vmem:[%s1396_s2 + $0x2] sm:$0x1] }
  0x77   :  { %v1057_v63 = vpop.eup %1056  ;;  %v939_v1 = vpack.c.bf16 %v301_v54, %v293_v49  ;;  %v300_v2 = vadd.f32 %v268_v55, %v106_v50  ;;  %v275_v3 = vmul.f32 %v1055_v57, %v243_v52  ;;  %v1205_v49 = vmov 0.0   ;;  %v899_v50 = vld [vmem:[%s1396_s2 + $0x1] sm:$0x1]  ;;  %v308_v55 = vld [vmem:[%s1396_s2] sm:$0x1] }
  0x78   :  { %v1059_v4 = vpop.eup %1058  ;;  %v299_v5 = vadd.f32 %v267_v61, %v105_v56  ;;  %v266_v17 = vmul.f32 %v1057_v63, %v234_v6  ;;  %v311_v51 = vmul.f32 1.442695, %v899_v50 }
  0x79   :  { %958 = vmatpush1.bf16.xpose.msra.mxu0 %v957_v27  ;;  %940 = vmatprep.subr.bf16.mxu1 %v939_v1  ;;  %v941_v9 = vpack.c.bf16 %v300_v2, %v292_v58  ;;  %v307_v11 = vadd.f32 %v275_v3, %v113_v60  ;;  %v1061_v13 = vpop.eup %1060  ;;  %v274_v18 = vmul.f32 %v1059_v4, %v242_v7  ;;  %v669_v27 = vld [vmem:[#allocation7 + $0x58] sm:$0xff]  ;;  %v782_v2 = vld [vmem:[#allocation8 + $0x8] sm:$0xff]  ;;  %v780_v7 = vld [vmem:[#allocation8] sm:$0xff] }
  0x7a   :  { %960 = vmatprep.subr.bf16.mxu0 %v959_v47  ;;  %v1063_v20 = vpop.eup %1062  ;;  %v670_v21 = vmul.f32 %v1061_v13, %v666_v8  ;;  %v298_v31 = vadd.f32 %v266_v17, %v104_v23  ;;  %v783_v3 = vmul.f32 1.442695, %v782_v2 }
  0x7b   :  { %942 = vmatpush1.bf16.xpose.msra.mxu1 %v941_v9  ;;  %v963_v22 = vpack.c.bf16 %v307_v11, %v299_v5  ;;  %v671_v25 = vmul.f32 %v1063_v20, %v667_v12  ;;  %v306_v32 = vadd.f32 %v274_v18, %v112_v24  ;;  %v786_v5 = vld [vmem:[#allocation8 + $0x10] sm:$0xff]  ;;  %v681_v9 = vmul.f32 1.442695, %v901_v10 }
  0x7c   :  { %967 = vmatprep.subr.bf16.mxu1 %v1203_v30  ;;  %v674_v28 = vadd.f32 %v670_v21, %v648_v15  ;;  %v902_v12 = vld [vmem:[%s1398_s4 + $0x2] sm:$0x1]  ;;  %v908_v21 = vld [vmem:[%s1400_s6 + $0x1] sm:$0x1] }
  0x7d   :  { %v675_v29 = vadd.f32 %v671_v25, %v649_v19  ;;  %v965_v35 = vpack.c.bf16 %v306_v32, %v298_v31  ;;  %v909_v24 = vld [vmem:[%s1400_s6 + $0x2] sm:$0x1]  ;;  %v789_v25 = vld [vmem:[%s1400_s6] sm:$0x1] }
  0x7f   :  { %v968_v33 = vpack.c.bf16 %v675_v29, %v674_v28 }
  0x80   :  { %572 = vmatmul.mubr.f32.vlgmr.msra.gmra.mrb[0].mxu0 %v1316_v59  ;;  %v655_v59 = vld [vmem:[#allocation7 + $0x30] sm:$0xff] }
  0x81   :  { %962 = vmatpush1.bf16.xpose.msra.mxu0 %v961_v16  ;;  %641 = vmatprep.mubr.f32.mxu0 %v358_v14  ;;  %v661_v37 = vmul.f32 1.442695, %v655_v59  ;;  %v678_v14 = vld [vmem:[%s1398_s4] sm:$0x1] }
  0x82   :  { %964 = vmatprep.subr.bf16.mxu0 %v963_v22  ;;  %432 = vmatmul.mubr.f32.vlgmr.msra.gmra.mrb[0].mxu1 %v1301_v26  ;;  %v792_v22 = vmul.f32 1.442695, %v908_v21 }
  0x83   :  { %970 = vmatpush3.bf16.xpose.msk.msra.mxu1 %vm1340_vm1, %v968_v33  ;;  %1064 = vpow2.f32 %v661_v37  ;;  %927 = vmatprep.mubr.msk.f32.mxu1 %vm1204_vm2, %v1205_v49 }
  0x84   :  { %971 = vmatprep.subr.bf16.mxu1 %v1203_v30  ;;  %1066 = vpow2.f32 %v663_v39 }
  0x85   :  { %1068 = vpow2.f32 %v311_v51 }
  0x86   :  { %1070 = vpow2.f32 %v783_v3 }
  0x87   :  { %1072 = vpow2.f32 %v681_v9 }
  0x88   :  { %1074 = vpow2.f32 %v792_v22 }
  0x89   :  { %966 = vmatpush1.bf16.xpose.msra.mxu0 %v965_v35 }
  0x8d   :  { %v1065_v41 = vpop.eup %1064 }
  0x8e   :  { %v1067_v43 = vpop.eup %1066  ;;  %v672_v26 = vmul.f32 %v1065_v41, %v668_v40 }
  0x8f   :  { %v673_v45 = vmul.f32 %v1067_v43, %v669_v27  ;;  %v1069_v52 = vpop.eup %1068 }
  0x90   :  { %642 = vmatmul.mubr.f32.vlgmr.msra.gmra.mrb[0].mxu0 %v356_v62  ;;  %v676_v46 = vadd.f32 %v672_v26, %v650_v42  ;;  %v315_v54 = vmul.f32 %v1069_v52, %v900_v53  ;;  %v1071_v4 = vpop.eup %1070 }
  0x91   :  { %v677_v47 = vadd.f32 %v673_v45, %v651_v44  ;;  %v787_v6 = vmul.f32 %v1071_v4, %v786_v5  ;;  %v1073_v11 = vpop.eup %1072 }
  0x92   :  { %v316_v57 = vadd.f32 %v315_v54, %v308_v55  ;;  %v685_v13 = vmul.f32 %v1073_v11, %v902_v12  ;;  %v1075_v23 = vpop.eup %1074 }
  0x93   :  { %v972_v48 = vpack.c.bf16 %v677_v47, %v676_v46  ;;  %v788_v8 = vadd.f32 %v787_v6, %v780_v7  ;;  %v796_v30 = vmul.f32 %v1075_v23, %v909_v24 }
  0x94   :  { %v321_v60 = vrot.slane %v316_v57, %v320_v38  ;;  %v686_v15 = vadd.f32 %v685_v13, %v678_v14 }
  0x95   :  { %974 = vmatpush3.bf16.xpose.msk.msra.mxu1 %vm1340_vm1, %v972_v48  ;;  %v797_v28 = vadd.f32 %v796_v30, %v789_v25 }
  0x96   :  { %930 = vmatprep.subr.mxu1 %v1205_v49  ;;  %v691_v20 = vrot.slane %v686_v15, %v320_v38 }
  0x97   :  { %v802_v29 = vrot.slane %v797_v28, %v320_v38 }
 0x155   :  { %v433_v56 = vpop.f32.mrb[0].mxu1 }
 0x156   :  { %v435_v58 = vpop.f32.mrb[1].mxu1  ;;  %v434_v61 = vadd.f32 %v433_v56, %v321_v60 }
 0x163   :  { %v643_v62 = vpop.f32.mrb[0].mxu0 }
 0x164   :  { %v976_v63 = vadd.f32 %v643_v62, %v434_v61  ;;  %v645_v0 = vpop.f32.mrb[1].mxu0 }
 0x166   :  { %v647_v1 = vmax.f32 %v976_v63, 0.0 }
 0x168   :  { %928 = vmatmul.mubr.msk.f32.vlgmr.msra.gmra.mrb[2].mxu1 %vm693_vm0, %v647_v1 }
 0x169   :  { %932 = vmatprep.mubr.msk.f32.mxu1 %vm1204_vm2, %v1205_v49  ;;  %931 = vmatpush3.xpose.msk.msra.mxu1 %vm693_vm0, %v788_v8 }
 0x23b   :  { %v775_v16 = vpop.f32.mrb[2].mxu1 }
 0x23c   :  { %v776_v17 = vadd.f32 %v775_v16, %v691_v20  ;;  %v929_v18 = vpop.f32.mrb[3].mxu1 }
 0x23e   :  { %v779_v19 = vmax.f32 %v776_v17, 0.0 }
 0x240   :  { %933 = vmatmul.mubr.msk.f32.vlgmr.msra.gmra.mrb[4].mxu1 %vm693_vm0, %v779_v19 }
 0x313   :  { %v876_v31 = vpop.f32.mrb[4].mxu1 }
 0x314   :  { %v877_v32 = vadd.f32 %v876_v31, %v802_v29  ;;  %v934_v33 = vpop.f32.mrb[5].mxu1 }
 0x316   :  { %881 = vst.msk [vmem:[#allocation10] sm:$0x3] %vm880_vm3, %v877_v32 }
 0x317   :  { %1175 = shalt.err (!%p1172_p8)
}
 0x318   :  { %s1176_s6 = scalar_lea.hbm %s1401_s7, 32 }
 0x319   :  { %p1177_p9 = scmp.ne.s32.totalorder %s1401_s7, %s1176_s6  ;;  %p1180_p10 = scmp.lt.u32.totalorder %s1176_s6, %s1401_s7 }
 0x31b   :  { %p1182_p11 = pnand %p1180_p10, %p1177_p9 }
 0x31d   :  { %1185 = shalt.err (!%p1182_p11)
}
 0x31e   :  { %891 = dma.vmem_to_hbm [thread:$0]  %s889_s19, 32, %s1401_s7, [#allocation4]  }
 0x31f   :  { %1192 = dma.done.wait [#allocation4], 32  }
 0x320   :  { %1193 = vsyncadd [#allocation4], 4294967264 }
 0x321   :  { %895 = vsyncpa [#allocation3], 1 }
 0x322   :  { %896 = vsyncpa [#allocation6], 1 }
 0x323   :  { %897 = vsyncpa [#allocation9], 1 }
 0x324   :  { %898 = vsyncpa [#allocation4], 1 }

</bundles_post_ra>
